<compile_context>
chip_gen: v7x
topology: tpu7x:2x2x1
jax: 0.10.0
libtpu: 0.0.40
codegen_flags: <defaults>
</compile_context>

<pallas_src>
import math

import jax
import jax.numpy as jnp
from jax.experimental import pallas as pl
from jax.experimental.pallas import tpu as pltpu

LANE = 1024              # slab width: 8 f32 vregs wide -> lane-dense, unmasked stores
MAX_BLOCK_ROWS = 1024    # up to 1024 x 1024 f32 = 4 MiB per block
SPLIT_ROWS = 16          # above this, force >= 2 grid steps (v7x megacore)
VMEM_LIMIT = 48 * 1024 * 1024


def _cdiv(a, b):
    return -(-a // b)


def _round_up(a, b):
    return _cdiv(a, b) * b


# ---------------------------------------------------------------------------
# Kernel 1: per-block partial sum of |x| (cast to f32 in-kernel).
# Fully parallel grid: each grid step writes its scalar partial into element
# [0, 0] of its own (8, 128) output block (rest zeros).  Ragged last blocks
# are masked against the true row count (edge-block padding is unspecified).
# ---------------------------------------------------------------------------
def _make_abs_partial_kernel(block_rows, rows):
    ragged = (rows % block_rows) != 0

    def kernel(x_ref, part_ref):
        xb = jnp.abs(x_ref[...].astype(jnp.float32))
        if ragged:
            r = jax.lax.broadcasted_iota(jnp.int32, xb.shape, 0)
            valid = (pl.program_id(0) * block_rows + r) < rows
            xb = jnp.where(valid, xb, 0.0)
        s = jnp.sum(xb)
        rr = jax.lax.broadcasted_iota(jnp.int32, (8, 128), 0)
        cc = jax.lax.broadcasted_iota(jnp.int32, (8, 128), 1)
        part_ref[...] = jnp.where((rr == 0) & (cc == 0), s, 0.0)

    return kernel


# ---------------------------------------------------------------------------
# Kernel 2: elementwise LSQ quantization: round(clamp(x * inv_s, 0, Qp)) * s
# s and inv_s (exact reciprocal, computed once outside) live in SMEM.
# Qp is a plain Python float (a literal in the jaxpr -> no captured consts).
# Output is written directly in the original dtype.
# ---------------------------------------------------------------------------
def _make_quant_kernel(qp):
    qp = float(qp)

    def kernel(s_ref, x_ref, o_ref):
        s = s_ref[0]
        inv_s = s_ref[1]
        v = jnp.clip(x_ref[...].astype(jnp.float32) * inv_s, 0.0, qp)
        # jnp.round == torch.round (round half to even)
        o_ref[...] = (jnp.round(v) * s).astype(o_ref.dtype)

    return kernel


def act_lsq_forward(x, nbits):
    """ActLSQ forward (first call, init_state == 0). Returns quantized x."""
    qp = float(2 ** nbits - 1)
    orig_shape = x.shape
    orig_dtype = x.dtype
    n = x.size

    xf = x.reshape(-1)                       # free for contiguous inputs
    rows = _cdiv(n, LANE)
    tail = rows * LANE - n
    if tail:
        # Only when numel is not a multiple of LANE (zero padding is
        # sum-neutral for pass 1).
        xf = jnp.pad(xf, (0, tail))
    x2 = xf.reshape(rows, LANE)

    if rows <= SPLIT_ROWS:
        block_rows = rows                    # full-array block, grid of 1
    else:
        # >= 2 blocks so the parallel grid spans both v7x TensorCores; cap at
        # 4 MiB blocks.  Ragged last block is handled by masking / dropped
        # out-of-bounds writes.
        block_rows = min(MAX_BLOCK_ROWS, _round_up(_cdiv(rows, 2), 8))
    num_tiles = _cdiv(rows, block_rows)

    cparams = pltpu.CompilerParams(
        dimension_semantics=("parallel",),
        vmem_limit_bytes=VMEM_LIMIT,
    )

    # --- pass 1: parallel partial sums of |x| --------------------------------
    partials = pl.pallas_call(
        _make_abs_partial_kernel(block_rows, rows),
        out_shape=jax.ShapeDtypeStruct((num_tiles * 8, 128), jnp.float32),
        grid_spec=pltpu.PrefetchScalarGridSpec(
            num_scalar_prefetch=0,
            grid=(num_tiles,),
            in_specs=[pl.BlockSpec((block_rows, LANE), lambda i: (i, 0))],
            out_specs=pl.BlockSpec((8, 128), lambda i: (i, 0)),
        ),
        compiler_params=cparams,
    )(x2)

    # --- scalar glue: step size from the TRUE element count ------------------
    abs_sum = jnp.sum(partials)
    mean_abs = abs_sum / jnp.float32(n)
    step_size = 2.0 * mean_abs / jnp.float32(math.sqrt(qp))
    # TODO(synk): all-zero x gives step_size == 0 -> inf/NaN; matches the
    # PyTorch module's own behavior, so no guard added.
    inv_step = 1.0 / step_size               # exact reciprocal, computed once
    s_arr = jnp.stack([step_size, inv_step]).astype(jnp.float32)

    # --- pass 2: elementwise quantization, output in original dtype ----------
    xq = pl.pallas_call(
        _make_quant_kernel(qp),
        out_shape=jax.ShapeDtypeStruct((rows, LANE), orig_dtype),
        grid_spec=pltpu.PrefetchScalarGridSpec(
            num_scalar_prefetch=0,
            grid=(num_tiles,),
            in_specs=[
                pl.BlockSpec(memory_space=pltpu.MemorySpace.SMEM),   # [s, 1/s]
                pl.BlockSpec((block_rows, LANE), lambda i: (i, 0)),  # x block
            ],
            out_specs=pl.BlockSpec((block_rows, LANE), lambda i: (i, 0)),
        ),
        compiler_params=cparams,
    )(s_arr, x2)

    if tail:
        return xq.reshape(-1)[:n].reshape(orig_shape)
    return xq.reshape(orig_shape)


def _reference(x, nbits):
    """Pure-JAX reference of the PyTorch forward."""
    qp = float(2 ** nbits - 1)
    s = 2.0 * jnp.mean(jnp.abs(x)) / math.sqrt(qp)
    return jnp.round(jnp.clip(x / s, 0.0, qp)) * s


if __name__ == "__main__":
    nbits = 4  # ActLSQ(nbits=4); step_size is initialized from x itself
    qp = float(2 ** nbits - 1)

    key = jax.random.PRNGKey(0)
    x = jax.random.normal(key, (2, 4, 16, 16), dtype=jnp.float32)  # NCHW

    out = jax.block_until_ready(act_lsq_forward(x, nbits))
    ref = _reference(x, nbits)
    assert out.shape == x.shape and out.dtype == x.dtype

    # Values must match the reference, except for (rare) round-half boundary
    # flips caused by benign 1-ulp differences (blocked sum / reciprocal
    # multiply), which show up as an off-by-one quantization level.
    s_ref = 2.0 * jnp.mean(jnp.abs(x)) / math.sqrt(qp)
    diff = jnp.abs(out.astype(jnp.float32) - ref)
    tol = 1e-5 + 1e-5 * jnp.abs(ref)
    exact = diff <= tol
    one_level = jnp.abs(diff - s_ref) <= tol
    assert bool(jnp.all(exact | one_level)), "mismatch vs reference"
    assert float(jnp.mean(~exact)) <= 1e-3, "too many boundary flips"

    print("KERNEL_OK")
</pallas_src>

<mosaic_0001>
module attributes {stable_mosaic.version = 11 : i64} {
  func.func @kernel(%arg0: i32, %arg1: memref<2x1024xf32, #tpu.memory_space<vmem>>, %arg2: memref<8x128xf32, #tpu.memory_space<vmem>>) attributes {dimension_semantics = [#tpu.dimension_semantics<parallel>], iteration_bounds = array<i64: 1>, scalar_prefetch = 0 : i64, scratch_operands = 0 : i64, tpu.core_type = #tpu.core_type<tc>, window_params = [{transform_indices = @transform_0, window_bounds = array<i64: 2, 1024>}, {transform_indices = @transform_1, window_bounds = array<i64: 8, 128>}]} {
    %c0 = arith.constant 0 : index
    %c0_0 = arith.constant 0 : index
    %0 = vector.load %arg1[%c0, %c0_0] : memref<2x1024xf32, #tpu.memory_space<vmem>>, vector<2x1024xf32>
    %1 = math.absf %0 : vector<2x1024xf32>
    %2 = vector.shape_cast %1 : vector<2x1024xf32> to vector<1x2x1024xf32>
    %cst = arith.constant dense<0.000000e+00> : vector<1xf32>
    %3 = vector.multi_reduction <add>, %2, %cst [1, 2] : vector<1x2x1024xf32> to vector<1xf32>
    %4 = vector.shape_cast %3 : vector<1xf32> to vector<1x1x1xf32>
    %5 = vector.extract %4[0, 0, 0] : f32 from vector<1x1x1xf32>
    %6 = tpu.iota {dimensions = array<i32: 0>} : vector<8x128xi32>
    %7 = tpu.iota {dimensions = array<i32: 1>} : vector<8x128xi32>
    %c0_i32 = arith.constant 0 : i32
    %8 = vector.broadcast %c0_i32 : i32 to vector<8x128xi32>
    %9 = arith.cmpi eq, %6, %8 : vector<8x128xi32>
    %c0_i32_1 = arith.constant 0 : i32
    %10 = vector.broadcast %c0_i32_1 : i32 to vector<8x128xi32>
    %11 = arith.cmpi eq, %7, %10 : vector<8x128xi32>
    %12 = arith.andi %9, %11 : vector<8x128xi1>
    %cst_2 = arith.constant 0.000000e+00 : f32
    %13 = vector.broadcast %5 : f32 to vector<8x128xf32>
    %14 = vector.broadcast %cst_2 : f32 to vector<8x128xf32>
    %15 = arith.select %12, %13, %14 : vector<8x128xi1>, vector<8x128xf32>
    %c0_3 = arith.constant 0 : index
    %c0_4 = arith.constant 0 : index
    %16 = vector.load %arg2[%c0_3, %c0_4] : memref<8x128xf32, #tpu.memory_space<vmem>>, vector<8x128xf32>
    tpu.vector_store %arg2[%c0_3, %c0_4], %15 {strides = array<i32>} : memref<8x128xf32, #tpu.memory_space<vmem>>, vector<8x128xf32>,
    return
  }
  func.func @transform_0(%arg0: i32) -> (i32, i32) {
    %c0_i32 = arith.constant 0 : i32
    %c0_i32_0 = arith.constant 0 : i32
    return %arg0, %c0_i32 : i32, i32
  }
  func.func @transform_1(%arg0: i32) -> (i32, i32) {
    %c0_i32 = arith.constant 0 : i32
    %c0_i32_0 = arith.constant 0 : i32
    return %arg0, %c0_i32 : i32, i32
  }
}

</mosaic_0001>

<bundles_post_ra>
// kernel: tpu_custom_call.1
= control target key start
LH: loop header
LB: loop body
LE: loop exit
PB: predicated region body
PF: predicated region fallthrough
CT: control target
= control target key end

     0   :  { %6 = vsyncpa [#allocation3], 0  ;;  %s217_s0 = inlined_call_operand.hbm [shape: f32[2,1024], index: 0, kind: input, shape index: {}]   ;;  %s218_s1 = inlined_call_operand.hbm [shape: f32[8,128], index: 1, kind: output, shape index: {}]  }
   0x1   :  { %7 = vsyncpa [#allocation4], 0  ;;  %s172_s6 = smov [#allocation2]   ;;  %s124_s10 = scalar_lea.hbm %s217_s0, 256 }
   0x2   :  { %s14_s7 = sshll.u32 %s172_s6, 4  ;;  %p125_p0 = scmp.ne.s32.totalorder %s217_s0, %s124_s10  ;;  %s15_s7 = int_to_ptr.vmem [resolvable:$true] %s14_s7 }
   0x3   :  { %p128_p1 = scmp.lt.u32.totalorder %s124_s10, %s217_s0 }
   0x5   :  { %p130_p2 = pnand %p128_p1, %p125_p0 }
   0x7   :  { %133 = shalt.err (!%p130_p2)
}
   0x8   :  { %s134_s15 = scalar_lea.vmem %s15_s7, 256  ;;  %p139_p4 = scmp.lt.s32.totalorder %s15_s7, %s15_s7 }
   0x9   :  { %p135_p3 = scmp.ne.s32.totalorder %s15_s7, %s134_s15  ;;  %p140_p5 = scmp.lt.s32.totalorder %s134_s15, %s134_s15 }
   0xb   :  { %p141_p6 = por %p140_p5, %p139_p4 }
   0xd   :  { %p142_p7 = pnand %p141_p6, %p135_p3 }
   0xf   :  { %145 = shalt.err (!%p142_p7)
}
  0x10   :  { %17 = dma.hbm_to_vmem [thread:$0]  %s217_s0, 256, %s15_s7, [#allocation3]  }
  0x11   :  { %168 = dma.done.wait [#allocation3], 256  }
  0x12   :  { %169 = vsyncadd [#allocation3], 4294967040  ;;  %v31_v0 = vlaneseq  ;;  %v173_v1 = vmov 1983009808   ;;  %v21_v6 = vld [vmem:[#allocation2] sm:$0xff]  ;;  %v22_v7 = vld [vmem:[#allocation2 + $0x8] sm:$0xff] }
  0x13   :  { %v29_v2 = vunpack.c.l.s4 %v173_v1  ;;  %v23_v8 = vand.u32 2147483647, %v21_v6  ;;  %v24_v9 = vand.u32 2147483647, %v22_v7  ;;  %vm69_vm0 = vcmask 1041408   ;;  %s174_s0 = smov [#allocation5]  }
  0x14   :  { %v32_v3 = vshrl.u32 %v31_v0, 7  ;;  %v97_v42 = vand.u32 127, %v31_v0  ;;  %s110_s18 = sshll.u32 %s174_s0, 4  ;;  %s111_s18 = int_to_ptr.vmem [resolvable:$true] %s110_s18 }
  0x15   :  { %v30_v4 = vunpack.c.0.s8 %v29_v2  ;;  %v27_v10 = vcombine.high %v23_v8, %v23_v8  ;;  %v44_v14 = vcombine.high %v24_v9, %v24_v9  ;;  %s146_s20 = scalar_lea.vmem %s111_s18, 128  ;;  %p151_p9 = scmp.lt.s32.totalorder %s111_s18, %s111_s18 }
  0x16   :  { %vm98_vm1 = vcmp.eq.s32.totalorder %v32_v3, 0  ;;  %vm99_vm2 = vcmp.eq.s32.totalorder %v97_v42, 0  ;;  %p147_p8 = scmp.ne.s32.totalorder %s111_s18, %s146_s20  ;;  %p152_p10 = scmp.lt.s32.totalorder %s146_s20, %s146_s20 }
  0x17   :  { %v33_v5 = vsub.s32 %v30_v4, %v32_v3  ;;  %vm100_vm3 = vmand %vm98_vm1, %vm99_vm2 }
  0x18   :  { %p153_p11 = por %p152_p10, %p151_p9 }
  0x19   :  { %v34_v11 = vrot.slane %v23_v8, %v33_v5  ;;  %v41_v12 = vrot.slane %v27_v10, %v33_v5  ;;  %v51_v15 = vrot.slane %v24_v9, %v33_v5  ;;  %v58_v21 = vrot.slane %v44_v14, %v33_v5 }
  0x1a   :  { %p154_p12 = pnand %p153_p11, %p147_p8 }
  0x1b   :  { %v42_v13 = vcombine.high %v34_v11, %v34_v11  ;;  %v70_v16 = vsel %vm69_vm0, %v34_v11, 0.0  ;;  %v43_v17 = vcombine.high %v41_v12, %v41_v12  ;;  %v73_v19 = vsel %vm69_vm0, %v41_v12, 0.0 }
  0x1c   :  { %v59_v22 = vcombine.high %v51_v15, %v51_v15  ;;  %v77_v25 = vsel %vm69_vm0, %v51_v15, 0.0  ;;  %v60_v27 = vcombine.high %v58_v21, %v58_v21  ;;  %v81_v30 = vsel %vm69_vm0, %v58_v21, 0.0 }
  0x1d   :  { %v71_v18 = vsel %vm69_vm0, %v42_v13, 0.0  ;;  %v75_v23 = vsel %vm69_vm0, %v43_v17, 0.0 }
  0x1e   :  { %v72_v20 = vadd.f32 %v71_v18, %v70_v16  ;;  %v79_v28 = vsel %vm69_vm0, %v59_v22, 0.0  ;;  %v83_v32 = vsel %vm69_vm0, %v60_v27, 0.0 }
  0x20   :  { %v74_v24 = vadd.f32 %v73_v19, %v72_v20 }
  0x22   :  { %v76_v26 = vadd.f32 %v75_v23, %v74_v24 }
  0x24   :  { %v78_v29 = vadd.f32 %v77_v25, %v76_v26 }
  0x26   :  { %v80_v31 = vadd.f32 %v79_v28, %v78_v29 }
  0x28   :  { %v82_v33 = vadd.f32 %v81_v30, %v80_v31 }
  0x2a   :  { %v84_v34 = vadd.f32 %v83_v32, %v82_v33 }
  0x2c   :  { %85 = vadd.xlane.f32.xlu0 %v84_v34 }
  0xb9   :  { %v86_v35 = vpop.xlane.xlu0 %85 }
  0xba   :  { %v87_v36 = vrot.slane %v86_v35, 4 }
  0xbc   :  { %v88_v37 = vadd.f32 %v87_v36, %v86_v35 }
  0xbe   :  { %v89_v38 = vrot.slane %v88_v37, 2 }
  0xc0   :  { %v90_v39 = vadd.f32 %v89_v38, %v88_v37 }
  0xc2   :  { %v91_v40 = vrot.slane %v90_v39, 1 }
  0xc4   :  { %v92_v41 = vadd.f32 %v91_v40, %v90_v39 }
  0xc6   :  { %119 = vpush %v92_v41 }
  0xf7   :  { %s120_s19 = spop %119 }
  0xf8   :  { %v101_v43 = vstv %s120_s19 }
  0xf9   :  { %v102_v44 = vsel %vm100_vm3, %v101_v43, 0.0 }
  0xfa   :  { %103 = vst [vmem:[#allocation5] sm:$0xff] %v102_v44 }
  0xfb   :  { %157 = shalt.err (!%p154_p12)
}
  0xfc   :  { %s158_s23 = scalar_lea.hbm %s218_s1, 128 }
  0xfd   :  { %p159_p13 = scmp.ne.s32.totalorder %s218_s1, %s158_s23  ;;  %p162_p0 = scmp.lt.u32.totalorder %s158_s23, %s218_s1 }
  0xff   :  { %p164_p1 = pnand %p162_p0, %p159_p13 }
 0x101   :  { %167 = shalt.err (!%p164_p1)
}
 0x102   :  { %113 = dma.vmem_to_hbm [thread:$0]  %s111_s18, 128, %s218_s1, [#allocation4]  }
 0x103   :  { %170 = dma.done.wait [#allocation4], 128  }
 0x104   :  { %171 = vsyncadd [#allocation4], 4294967168 }
 0x105   :  { %117 = vsyncpa [#allocation3], 1 }
 0x106   :  { %118 = vsyncpa [#allocation4], 1 }

</bundles_post_ra>
